<compile_context>
chip_gen: v6e
topology: v6e:2x2x1
jax: 0.10.0
libtpu: 0.0.40
codegen_flags: <defaults>
</compile_context>

<pallas_src>
import jax
import jax.numpy as jnp
from jax.experimental import pallas as pl
from jax.experimental.pallas import tpu as pltpu

IN_DIM = 512
HID_DIM = 256
LATENT = 128


def vae_kernel(x_ref, eps_ref,
               w1_ref, b1_ref,
               w2_ref, b2_ref,      # fused fc21|fc22: (256, 256), (1, 256)
               w3_ref, b3_ref,
               w4_ref, b4_ref,
               out_ref):
    # ---- encoder ----
    x = x_ref[...].astype(jnp.bfloat16)
    h1 = jnp.dot(x, w1_ref[...], preferred_element_type=jnp.float32) + b1_ref[...]
    h1 = jnp.maximum(h1, 0.0)                                    # relu (f32)

    y = jnp.dot(h1.astype(jnp.bfloat16), w2_ref[...],
                preferred_element_type=jnp.float32) + b2_ref[...]
    mu = y[:, :LATENT]                                           # static 128-aligned slice
    logvar = y[:, LATENT:]

    # ---- reparametrize: z = eps * exp(0.5 * logvar) + mu  (exp -> EUP slot) ----
    z = eps_ref[...] * jnp.exp(0.5 * logvar) + mu

    # ---- decoder ----
    h3 = jnp.dot(z.astype(jnp.bfloat16), w3_ref[...],
                 preferred_element_type=jnp.float32) + b3_ref[...]
    h3 = jnp.maximum(h3, 0.0)                                    # relu (f32)
    x_rec = jnp.dot(h3.astype(jnp.bfloat16), w4_ref[...],
                    preferred_element_type=jnp.float32) + b4_ref[...]
    out_ref[...] = jnp.tanh(x_rec)


def vae_forward(x, eps, params, *, tm=128):
    """x: (B, 512) f32, eps: (B, 128) f32 standard-normal noise."""
    B = x.shape[0]
    tm = min(tm, B)
    assert B % tm == 0 and tm % 8 == 0, \
        "batch must be a multiple of the (8-aligned) batch tile"
    (w1, b1, w2, b2, w3, b3, w4, b4) = params

    # batch-tiled activations / outputs
    batch_spec = lambda d: pl.BlockSpec((tm, d), lambda i: (i, 0))
    # weights & biases: full array, constant block index -> VMEM-resident across the grid
    resident = lambda a: pl.BlockSpec(a.shape, lambda i: (0, 0))

    in_specs = [batch_spec(IN_DIM), batch_spec(LATENT),
                resident(w1), resident(b1),
                resident(w2), resident(b2),
                resident(w3), resident(b3),
                resident(w4), resident(b4)]

    return pl.pallas_call(
        vae_kernel,
        out_shape=jax.ShapeDtypeStruct((B, IN_DIM), jnp.float32),
        grid=(B // tm,),
        in_specs=in_specs,
        out_specs=batch_spec(IN_DIM),
        compiler_params=pltpu.CompilerParams(
            dimension_semantics=("parallel",),   # shard batch tiles across TCs
            vmem_limit_bytes=8 << 20,            # ~0.6 MiB weights + small activations
        ),
    )(x, eps, w1, b1, w2, b2, w3, b3, w4, b4)


def init_params(key):
    """Deterministic synthetic params matching each nn.Linear in the module.
    Weights pre-transposed to (in, out) and stored bf16; fc21/fc22 fused."""
    ks = jax.random.split(key, 10)

    def linear(kw, kb, fan_in, fan_out):
        bound = 1.0 / jnp.sqrt(fan_in)
        w = jax.random.uniform(kw, (fan_in, fan_out), jnp.float32, -bound, bound)
        b = jax.random.uniform(kb, (1, fan_out), jnp.float32, -bound, bound)
        return w, b

    w1, b1 = linear(ks[0], ks[1], IN_DIM, HID_DIM)      # fc1
    w21, b21 = linear(ks[2], ks[3], HID_DIM, LATENT)    # fc21 (mu)
    w22, b22 = linear(ks[4], ks[5], HID_DIM, LATENT)    # fc22 (logvar)
    w3, b3 = linear(ks[6], ks[7], LATENT, HID_DIM)      # fc3
    w4, b4 = linear(ks[8], ks[9], HID_DIM, IN_DIM)      # fc4

    # fuse mu/logvar projections into one N=256 GEMM
    w2 = jnp.concatenate([w21, w22], axis=1)            # (256, 256)
    b2 = jnp.concatenate([b21, b22], axis=1)            # (1, 256)

    to_bf16 = lambda w: w.astype(jnp.bfloat16)
    return (to_bf16(w1), b1, to_bf16(w2), b2, to_bf16(w3), b3, to_bf16(w4), b4)


def reference_forward(x, eps, params):
    """Pure-JAX reference using the same bf16-weight / f32-accumulate recipe."""
    (w1, b1, w2, b2, w3, b3, w4, b4) = params
    dot = lambda a, w: jnp.dot(a.astype(jnp.bfloat16), w,
                               preferred_element_type=jnp.float32)
    h1 = jnp.maximum(dot(x, w1) + b1, 0.0)
    y = dot(h1, w2) + b2
    mu, logvar = y[:, :LATENT], y[:, LATENT:]
    z = eps * jnp.exp(0.5 * logvar) + mu
    h3 = jnp.maximum(dot(z, w3) + b3, 0.0)
    return jnp.tanh(dot(h3, w4) + b4)


if __name__ == "__main__":
    key = jax.random.PRNGKey(0)
    k_param, k_x, k_eps = jax.random.split(key, 3)

    B = 32
    params = init_params(k_param)
    x = jax.random.normal(k_x, (B, IN_DIM), jnp.float32)
    # eps replaces torch.FloatTensor(std.size()).normal_() — supplied explicitly
    # (the reparametrization noise is an input, keeping the kernel deterministic).
    eps = jax.random.normal(k_eps, (B, LATENT), jnp.float32)

    out = vae_forward(x, eps, params, tm=8)   # small tile -> exercises a 4-step batch grid
    out = jax.block_until_ready(out)

    ref = reference_forward(x, eps, params)
    assert out.shape == (B, IN_DIM)
    assert jnp.allclose(out, ref, atol=2e-2, rtol=2e-2), \
        f"max abs err {jnp.max(jnp.abs(out - ref))}"
    print("KERNEL_OK")
</pallas_src>

<mosaic_0001>
module attributes {stable_mosaic.version = 11 : i64} {
  func.func @vae_kernel(%arg0: i32, %arg1: memref<8x512xf32, #tpu.memory_space<vmem>>, %arg2: memref<8x128xf32, #tpu.memory_space<vmem>>, %arg3: memref<512x256xbf16, #tpu.memory_space<vmem>>, %arg4: memref<1x256xf32, #tpu.memory_space<vmem>>, %arg5: memref<256x256xbf16, #tpu.memory_space<vmem>>, %arg6: memref<1x256xf32, #tpu.memory_space<vmem>>, %arg7: memref<128x256xbf16, #tpu.memory_space<vmem>>, %arg8: memref<1x256xf32, #tpu.memory_space<vmem>>, %arg9: memref<256x512xbf16, #tpu.memory_space<vmem>>, %arg10: memref<1x512xf32, #tpu.memory_space<vmem>>, %arg11: memref<8x512xf32, #tpu.memory_space<vmem>>) attributes {dimension_semantics = [#tpu.dimension_semantics<parallel>], iteration_bounds = array<i64: 4>, scalar_prefetch = 0 : i64, scratch_operands = 0 : i64, tpu.core_type = #tpu.core_type<tc>, window_params = [{transform_indices = @transform_0, window_bounds = array<i64: 8, 512>}, {transform_indices = @transform_1, window_bounds = array<i64: 8, 128>}, {pipeline_mode = #tpu.pipeline_mode<synchronous>, transform_indices = @transform_2, window_bounds = array<i64: 512, 256>}, {pipeline_mode = #tpu.pipeline_mode<synchronous>, transform_indices = @transform_3, window_bounds = array<i64: 1, 256>}, {pipeline_mode = #tpu.pipeline_mode<synchronous>, transform_indices = @transform_4, window_bounds = array<i64: 256, 256>}, {pipeline_mode = #tpu.pipeline_mode<synchronous>, transform_indices = @transform_5, window_bounds = array<i64: 1, 256>}, {pipeline_mode = #tpu.pipeline_mode<synchronous>, transform_indices = @transform_6, window_bounds = array<i64: 128, 256>}, {pipeline_mode = #tpu.pipeline_mode<synchronous>, transform_indices = @transform_7, window_bounds = array<i64: 1, 256>}, {pipeline_mode = #tpu.pipeline_mode<synchronous>, transform_indices = @transform_8, window_bounds = array<i64: 256, 512>}, {pipeline_mode = #tpu.pipeline_mode<synchronous>, transform_indices = @transform_9, window_bounds = array<i64: 1, 512>}, {transform_indices = @transform_10, window_bounds = array<i64: 8, 512>}]} {
    %c0 = arith.constant 0 : index
    %c0_0 = arith.constant 0 : index
    %0 = vector.load %arg1[%c0, %c0_0] : memref<8x512xf32, #tpu.memory_space<vmem>>, vector<8x512xf32>
    %1 = arith.truncf %0 : vector<8x512xf32> to vector<8x512xbf16>
    %c0_1 = arith.constant 0 : index
    %c0_2 = arith.constant 0 : index
    %2 = vector.load %arg3[%c0_1, %c0_2] : memref<512x256xbf16, #tpu.memory_space<vmem>>, vector<512x256xbf16>
    %cst = arith.constant dense<0.000000e+00> : vector<8x256xf32>
    %3 = tpu.matmul %1, %2, %cst {dimension_numbers = #tpu.dot_dimension_numbers<[1], [0], [0], [1], [0, 0, 1, 1], [], []>} : vector<8x512xbf16>, vector<512x256xbf16>, vector<8x256xf32> -> vector<8x256xf32>
    %c0_3 = arith.constant 0 : index
    %c0_4 = arith.constant 0 : index
    %4 = vector.load %arg4[%c0_3, %c0_4] : memref<1x256xf32, #tpu.memory_space<vmem>>, vector<1x256xf32>
    %5 = vector.broadcast %4 : vector<1x256xf32> to vector<8x256xf32>
    %6 = arith.addf %3, %5 : vector<8x256xf32>
    %cst_5 = arith.constant 0.000000e+00 : f32
    %7 = vector.broadcast %cst_5 : f32 to vector<8x256xf32>
    %8 = arith.maximumf %6, %7 : vector<8x256xf32>
    %9 = arith.truncf %8 : vector<8x256xf32> to vector<8x256xbf16>
    %c0_6 = arith.constant 0 : index
    %c0_7 = arith.constant 0 : index
    %10 = vector.load %arg5[%c0_6, %c0_7] : memref<256x256xbf16, #tpu.memory_space<vmem>>, vector<256x256xbf16>
    %cst_8 = arith.constant dense<0.000000e+00> : vector<8x256xf32>
    %11 = tpu.matmul %9, %10, %cst_8 {dimension_numbers = #tpu.dot_dimension_numbers<[1], [0], [0], [1], [0, 0, 1, 1], [], []>} : vector<8x256xbf16>, vector<256x256xbf16>, vector<8x256xf32> -> vector<8x256xf32>
    %c0_9 = arith.constant 0 : index
    %c0_10 = arith.constant 0 : index
    %12 = vector.load %arg6[%c0_9, %c0_10] : memref<1x256xf32, #tpu.memory_space<vmem>>, vector<1x256xf32>
    %13 = vector.broadcast %12 : vector<1x256xf32> to vector<8x256xf32>
    %14 = arith.addf %11, %13 : vector<8x256xf32>
    %15 = vector.extract_strided_slice %14 {offsets = [0, 0], sizes = [8, 128], strides = [1, 1]} : vector<8x256xf32> to vector<8x128xf32>
    %16 = vector.extract_strided_slice %14 {offsets = [0, 128], sizes = [8, 128], strides = [1, 1]} : vector<8x256xf32> to vector<8x128xf32>
    %c0_11 = arith.constant 0 : index
    %c0_12 = arith.constant 0 : index
    %17 = vector.load %arg2[%c0_11, %c0_12] : memref<8x128xf32, #tpu.memory_space<vmem>>, vector<8x128xf32>
    %cst_13 = arith.constant 5.000000e-01 : f32
    %18 = vector.broadcast %cst_13 : f32 to vector<8x128xf32>
    %19 = arith.mulf %18, %16 : vector<8x128xf32>
    %20 = math.exp %19 : vector<8x128xf32>
    %21 = arith.mulf %17, %20 : vector<8x128xf32>
    %22 = arith.addf %21, %15 : vector<8x128xf32>
    %23 = arith.truncf %22 : vector<8x128xf32> to vector<8x128xbf16>
    %c0_14 = arith.constant 0 : index
    %c0_15 = arith.constant 0 : index
    %24 = vector.load %arg7[%c0_14, %c0_15] : memref<128x256xbf16, #tpu.memory_space<vmem>>, vector<128x256xbf16>
    %cst_16 = arith.constant dense<0.000000e+00> : vector<8x256xf32>
    %25 = tpu.matmul %23, %24, %cst_16 {dimension_numbers = #tpu.dot_dimension_numbers<[1], [0], [0], [1], [0, 0, 1, 1], [], []>} : vector<8x128xbf16>, vector<128x256xbf16>, vector<8x256xf32> -> vector<8x256xf32>
    %c0_17 = arith.constant 0 : index
    %c0_18 = arith.constant 0 : index
    %26 = vector.load %arg8[%c0_17, %c0_18] : memref<1x256xf32, #tpu.memory_space<vmem>>, vector<1x256xf32>
    %27 = vector.broadcast %26 : vector<1x256xf32> to vector<8x256xf32>
    %28 = arith.addf %25, %27 : vector<8x256xf32>
    %cst_19 = arith.constant 0.000000e+00 : f32
    %29 = vector.broadcast %cst_19 : f32 to vector<8x256xf32>
    %30 = arith.maximumf %28, %29 : vector<8x256xf32>
    %31 = arith.truncf %30 : vector<8x256xf32> to vector<8x256xbf16>
    %c0_20 = arith.constant 0 : index
    %c0_21 = arith.constant 0 : index
    %32 = vector.load %arg9[%c0_20, %c0_21] : memref<256x512xbf16, #tpu.memory_space<vmem>>, vector<256x512xbf16>
    %cst_22 = arith.constant dense<0.000000e+00> : vector<8x512xf32>
    %33 = tpu.matmul %31, %32, %cst_22 {dimension_numbers = #tpu.dot_dimension_numbers<[1], [0], [0], [1], [0, 0, 1, 1], [], []>} : vector<8x256xbf16>, vector<256x512xbf16>, vector<8x512xf32> -> vector<8x512xf32>
    %c0_23 = arith.constant 0 : index
    %c0_24 = arith.constant 0 : index
    %34 = vector.load %arg10[%c0_23, %c0_24] : memref<1x512xf32, #tpu.memory_space<vmem>>, vector<1x512xf32>
    %35 = vector.broadcast %34 : vector<1x512xf32> to vector<8x512xf32>
    %36 = arith.addf %33, %35 : vector<8x512xf32>
    %37 = math.tanh %36 : vector<8x512xf32>
    %c0_25 = arith.constant 0 : index
    %c0_26 = arith.constant 0 : index
    %38 = vector.load %arg11[%c0_25, %c0_26] : memref<8x512xf32, #tpu.memory_space<vmem>>, vector<8x512xf32>
    tpu.vector_store %arg11[%c0_25, %c0_26], %37 {strides = array<i32>} : memref<8x512xf32, #tpu.memory_space<vmem>>, vector<8x512xf32>,
    return
  }
  func.func @transform_0(%arg0: i32) -> (i32, i32) {
    %c0_i32 = arith.constant 0 : i32
    %c0_i32_0 = arith.constant 0 : i32
    return %arg0, %c0_i32 : i32, i32
  }
  func.func @transform_1(%arg0: i32) -> (i32, i32) {
    %c0_i32 = arith.constant 0 : i32
    %c0_i32_0 = arith.constant 0 : i32
    return %arg0, %c0_i32 : i32, i32
  }
  func.func @transform_2(%arg0: i32) -> (i32, i32) {
    %c0_i32 = arith.constant 0 : i32
    %c0_i32_0 = arith.constant 0 : i32
    %c0_i32_1 = arith.constant 0 : i32
    return %c0_i32, %c0_i32_0 : i32, i32
  }
  func.func @transform_3(%arg0: i32) -> (i32, i32) {
    %c0_i32 = arith.constant 0 : i32
    %c0_i32_0 = arith.constant 0 : i32
    %c0_i32_1 = arith.constant 0 : i32
    return %c0_i32, %c0_i32_0 : i32, i32
  }
  func.func @transform_4(%arg0: i32) -> (i32, i32) {
    %c0_i32 = arith.constant 0 : i32
    %c0_i32_0 = arith.constant 0 : i32
    %c0_i32_1 = arith.constant 0 : i32
    return %c0_i32, %c0_i32_0 : i32, i32
  }
  func.func @transform_5(%arg0: i32) -> (i32, i32) {
    %c0_i32 = arith.constant 0 : i32
    %c0_i32_0 = arith.constant 0 : i32
    %c0_i32_1 = arith.constant 0 : i32
    return %c0_i32, %c0_i32_0 : i32, i32
  }
  func.func @transform_6(%arg0: i32) -> (i32, i32) {
    %c0_i32 = arith.constant 0 : i32
    %c0_i32_0 = arith.constant 0 : i32
    %c0_i32_1 = arith.constant 0 : i32
    return %c0_i32, %c0_i32_0 : i32, i32
  }
  func.func @transform_7(%arg0: i32) -> (i32, i32) {
    %c0_i32 = arith.constant 0 : i32
    %c0_i32_0 = arith.constant 0 : i32
    %c0_i32_1 = arith.constant 0 : i32
    return %c0_i32, %c0_i32_0 : i32, i32
  }
  func.func @transform_8(%arg0: i32) -> (i32, i32) {
    %c0_i32 = arith.constant 0 : i32
    %c0_i32_0 = arith.constant 0 : i32
    %c0_i32_1 = arith.constant 0 : i32
    return %c0_i32, %c0_i32_0 : i32, i32
  }
  func.func @transform_9(%arg0: i32) -> (i32, i32) {
    %c0_i32 = arith.constant 0 : i32
    %c0_i32_0 = arith.constant 0 : i32
    %c0_i32_1 = arith.constant 0 : i32
    return %c0_i32, %c0_i32_0 : i32, i32
  }
  func.func @transform_10(%arg0: i32) -> (i32, i32) {
    %c0_i32 = arith.constant 0 : i32
    %c0_i32_0 = arith.constant 0 : i32
    return %arg0, %c0_i32 : i32, i32
  }
}

</mosaic_0001>

<bundles_post_ra>
// kernel: tpu_custom_call.1
= control target key start
LH: loop header
LB: loop body
LE: loop exit
PB: predicated region body
PF: predicated region fallthrough
CT: control target
= control target key end

     0   :  { %s3204_s0 = inlined_call_operand.hbm [shape: f32[32,512], index: 0, kind: input, shape index: {}]   ;;  %s3205_s1 = inlined_call_operand.hbm [shape: f32[32,128], index: 1, kind: input, shape index: {}]   ;;  %s3206_s2 = inlined_call_operand.hbm [shape: bf16[512,256], index: 2, kind: input, shape index: {}]   ;;  %s3207_s3 = inlined_call_operand.vmem [shape: f32[1,256], index: 3, kind: input, shape index: {}]   ;;  %s3208_s4 = inlined_call_operand.hbm [shape: bf16[256,256], index: 4, kind: input, shape index: {}]   ;;  %s3209_s5 = inlined_call_operand.vmem [shape: f32[1,256], index: 5, kind: input, shape index: {}]   ;;  %s3210_s6 = inlined_call_operand.hbm [shape: bf16[128,256], index: 6, kind: input, shape index: {}]   ;;  %s3211_s7 = inlined_call_operand.vmem [shape: f32[1,256], index: 7, kind: input, shape index: {}]   ;;  %s3212_s8 = inlined_call_operand.hbm [shape: bf16[256,512], index: 8, kind: input, shape index: {}]   ;;  %s3213_s9 = inlined_call_operand.vmem [shape: f32[1,512], index: 9, kind: input, shape index: {}]   ;;  %s3214_s10 = inlined_call_operand.hbm [shape: f32[32,512], index: 10, kind: output, shape index: {}]  }
   0x1   :  { %3219 = sst [smem:[#allocation21_spill]] %s3204_s0 }
   0x2   :  { %3220 = sst [smem:[#allocation22_spill]] %s3206_s2 }
   0x3   :  { %3221 = sst [smem:[#allocation23_spill]] %s3208_s4 }
   0x4   :  { %3222 = sst [smem:[#allocation24_spill]] %s3210_s6 }
   0x5   :  { %3223 = sst [smem:[#allocation25_spill]] %s3212_s8 }
   0x6   :  { %15 = vsyncpa [#allocation3], 0 }
   0x7   :  { %17 = vsyncpa [#allocation3 + $0x1], 0 }
   0x8   :  { %18 = vsyncpa [#allocation6], 0 }
   0x9   :  { %20 = vsyncpa [#allocation6 + $0x1], 0 }
   0xa   :  { %21 = vsyncpa [#allocation9], 0 }
   0xb   :  { %22 = vsyncpa [#allocation12], 0 }
   0xc   :  { %23 = vsyncpa [#allocation4], 0 }
   0xd   :  { %25 = vsyncpa [#allocation4 + $0x1], 0  ;;  %s2892_s13 = smov 0   ;;  %s2894_s14 = smov 0  }
   0xe   :  { %s2896_s15 = smov 0   ;;  %s2898_s16 = smov 0  }
   0xf LB: > { %s2825_s17 = smov [#allocation7]   ;;  %s2913_s19 = sadd.s32 4294967295, %s2823_s16   ;;  %s2823_s16 = sphi %s2898_s16, %s3253_s16   ;;  %s2819_s15 = sphi %s2896_s15, %s3252_s15   ;;  %s2815_s14 = sphi %s2894_s14, %s3251_s14   ;;  %s2811_s13 = sphi %s2892_s13, %s3250_s13  }
  0x10   : > { %s294_s18 = sshll.u32 %s2825_s17, 4  ;;  %p2010_p0 = scmp.ge.s32.totalorder %s2823_s16, 1  ;;  %s295_s18 = int_to_ptr.vmem [resolvable:$true] %s294_s18 }
  0x11   : > { %p3215_p1 = scmp.eq.s32.totalorder %s2913_s19, 0  ;;  %p282_p2 = scmp.lt.s32.totalorder %s2823_s16, 5 }
  0x12   : > { %s2826_s21 = smov [#allocation8]   ;;  %s2827_s24 = smov [#allocation10]  }
  0x13   : > { %p2918_p3 = pnand %p2010_p0, %p282_p2  ;;  %s310_s22 = sshll.u32 %s2826_s21, 4  ;;  %s2930_s22 = int_to_ptr.vmem [resolvable:$true] %s310_s22 }
  0x14   : > { %s326_s25 = sshll.u32 %s2827_s24, 4  ;;  %s2594_s26 = scalar_lea.vmem %s295_s18, 8192  ;;  %s2932_s25 = int_to_ptr.vmem [resolvable:$true] %s326_s25 }
  0x15   : > { %s3224_s20 = scalar_select %p2918_p3, 1, 0 }
  0x16   : > { %p2234_p4 = pneg %p2918_p3  ;;  %p2595_p7 = scmp.ne.s32.totalorder %s295_s18, %s2594_s26 }
  0x17   : > { %p2602_p10 = scmp.lt.s32.totalorder %s295_s18, %s295_s18  ;;  %p2603_p11 = scmp.lt.s32.totalorder %s2594_s26, %s2594_s26 }
  0x18   : > { %p2926_p5 = pnand %p2234_p4, %p3215_p1 }
  0x19   : > { %p2604_p12 = por %p2603_p11, %p2602_p10 }
  0x1a   : > { %p2585_p6 = pneg %p2926_p5 }
  0x1c   : > { %p2597_p8 = pnand %p2595_p7, %p2585_p6 }
  0x1e   : > { %p2598_p9 = pneg %p2597_p8 }
  0x20   : > { %p2605_p13 = pnand %p2604_p12, %p2598_p9 }
  0x22   : > { %2608 = shalt.err (!%p2605_p13)
}
  0x23   : > { %s2828_s27 = smov 128   ;;  %s2829_s28 = smov 8  }
  0x24   : > { %s3226_s2 = sld [smem:[#allocation22_spill]]  ;;  %s2620_s11 = scalar_lea.vmem %s2930_s22, 4096 }
  0x25   : > { %p2621_p0 = scmp.ne.s32.totalorder %s2930_s22, %s2620_s11  ;;  %p2628_p7 = scmp.lt.s32.totalorder %s2930_s22, %s2930_s22 }
  0x26   : > { %p2629_p8 = scmp.lt.s32.totalorder %s2620_s11, %s2620_s11 }
  0x27   : > { %p2623_p2 = pnand %p2621_p0, %p2585_p6 }
  0x28   : > { %p2630_p9 = por %p2629_p8, %p2628_p7 }
  0x29   : > { %p2624_p4 = pneg %p2623_p2 }
  0x2a   : > { %2237 = dma.hbm_to_vmem [thread:$0]  (!%p2926_p5), %s3226_s2, 8192, %s295_s18, [#allocation6], %s2828_s27, %s2828_s27, %s2829_s28  }
  0x2b   : > { %p2631_p10 = pnand %p2630_p9, %p2624_p4 }
  0x2d   : > { %2634 = shalt.err (!%p2631_p10)
}
  0x2e   : > { %s3227_s4 = sld [smem:[#allocation23_spill]]  ;;  %s2646_s18 = scalar_lea.vmem %s2932_s25, 2048 }
  0x2f   : > { %p2647_p11 = scmp.ne.s32.totalorder %s2932_s25, %s2646_s18  ;;  %p2654_p0 = scmp.lt.s32.totalorder %s2932_s25, %s2932_s25 }
  0x30   : > { %p2655_p2 = scmp.lt.s32.totalorder %s2646_s18, %s2646_s18 }
  0x31   : > { %p2649_p12 = pnand %p2647_p11, %p2585_p6 }
  0x32   : > { %p2656_p4 = por %p2655_p2, %p2654_p0 }
  0x33   : > { %p2650_p13 = pneg %p2649_p12 }
  0x34   : > { %2240 = dma.hbm_to_vmem [thread:$0]  (!%p2926_p5), %s3227_s4, 4096, %s2930_s22, [#allocation9], %s2828_s27, %s2828_s27, %s2829_s28  }
  0x35   : > { %p2657_p7 = pnand %p2656_p4, %p2650_p13 }
  0x37   : > { %2660 = shalt.err (!%p2657_p7)
}
  0x38   : > { %s3228_s6 = sld [smem:[#allocation24_spill]]  ;;  %s2830_s22 = smov [#allocation11]  }
  0x39   : > { %s342_s26 = sshll.u32 %s2830_s22, 4  ;;  %s343_s26 = int_to_ptr.vmem [resolvable:$true] %s342_s26 }
  0x3a   : > { %s2672_s29 = scalar_lea.vmem %s343_s26, 8192  ;;  %p2680_p11 = scmp.lt.s32.totalorder %s343_s26, %s343_s26 }
  0x3b   : > { %p2673_p8 = scmp.ne.s32.totalorder %s343_s26, %s2672_s29  ;;  %p2681_p12 = scmp.lt.s32.totalorder %s2672_s29, %s2672_s29 }
  0x3d   : > { %p2675_p9 = pnand %p2673_p8, %p2585_p6  ;;  %p2682_p13 = por %p2681_p12, %p2680_p11 }
  0x3e   : > { %2243 = dma.hbm_to_vmem [thread:$0]  (!%p2926_p5), %s3228_s6, 2048, %s2932_s25, [#allocation9], %s2828_s27, %s2828_s27, %s2829_s28  }
  0x3f   : > { %p2676_p10 = pneg %p2675_p9 }
  0x41   : > { %p2683_p0 = pnand %p2682_p13, %p2676_p10 }
  0x43   : > { %2686 = shalt.err (!%p2683_p0)
}
  0x44   : > { %s2831_s30 = smov 256   ;;  %s2832_s25 = smov 16  }
  0x45   : > { %s3229_s8 = sld [smem:[#allocation25_spill]]  ;;  %s2009_s11 = sadd.s32 4294967294, %s2823_s16  }
  0x46   : > { %s2980_s12 = sadd.s32 1, %s2823_s16   ;;  %s38_s18 = sadd.s32 1, %s2819_s15 }
  0x47   : > { %s35_s17 = ssub.s32 %s2823_s16, %s2980_s12  ;;  %p45_p2 = scmp.ne.s32.totalorder %s2819_s15, %s2815_s14 }
  0x48   : > { %p36_p6 = scmp.eq.s32.totalorder %s35_s17, 0  ;;  %p46_p4 = scmp.eq.s32.totalorder %s2823_s16, 0 }
  0x49   : > { %p51_p7 = scmp.ne.s32.totalorder %s2815_s14, %s2811_s13  ;;  %p269_p9 = scmp.eq.s32.totalorder %s2913_s19, 3 }
  0x4a   : > { %s2991_s21 = scalar_select %p36_p6, %s2819_s15, %s38_s18  }
  0x4b   : > { %2246 = dma.hbm_to_vmem [thread:$0]  (!%p2926_p5), %s3229_s8, 8192, %s343_s26, [#allocation12], %s2831_s30, %s2831_s30, %s2832_s25  }
  0x4c   : > { %3230 = sst [smem:[#allocation20_spill]] %s2991_s21  ;;  %p2993_p8 = por %p46_p4, %p45_p2 }
  0x4d   : > { %p2999_p5 = por %p3215_p1, %p51_p7  ;;  %p275_p10 = scmp.eq.s32.totalorder %s2009_s11, 3 }
  0x4e   : > { %p2262_p11 = scmp.lt.s32.totalorder %s2823_s16, 4  ;;  %s3006_s22 = sand.u32 1, %s2819_s15  }
  0x4f   : > { %s3232_s24 = scalar_select %p2999_p5, 1, 0 }
  0x50   : > { %p3008_p12 = por %p269_p9, %p45_p2  ;;  %p3012_p13 = por %p275_p10, %p51_p7 }
  0x51   : > { %s2016_s30 = sshll.u32 %s3006_s22, 5  ;;  %s2210_s25 = sshll.u32 %s2823_s16, 9 }
  0x52   : > { %s3233_s26 = scalar_select %p3008_p12, 1, 0 }
  0x53   : > { %s3234_s29 = scalar_select %p3012_p13, 1, 0 }
  0x54   : > { %s3235_s0 = sld [smem:[#allocation21_spill]]  ;;  %s363_s17 = scalar_lea.vmem [#allocation2], %s2016_s30 }
  0x55   : > { %s371_s18 = sshll.u32 %s363_s17, 4  ;;  %p3027_p0 = pnand %p2262_p11, %p2993_p8  ;;  %s3023_s18 = int_to_ptr.vmem [resolvable:$true] %s371_s18 }
  0x56   : > { %s360_s8 = scalar_lea.sflag [#allocation3], %s3006_s22 }
  0x57   : > { %p2689_p2 = pneg %p3027_p0 }
  0x5a   : > { %s3021_s11 = scalar_lea.hbm %s3235_s0, %s2210_s25  ;;  %s2692_s23 = scalar_lea.hbm %s3235_s0, 2048 }
  0x5b   : > { %s2687_s27 = scalar_lea.hbm %s3021_s11, 512  ;;  %p2693_p8 = scmp.lt.s32.totalorder %s3021_s11, %s3235_s0 }
  0x5c   : > { %p2688_p6 = scmp.ne.s32.totalorder %s3021_s11, %s2687_s27  ;;  %p2694_p9 = scmp.lt.s32.totalorder %s2692_s23, %s2687_s27 }
  0x5e   : > { %p2690_p4 = pnand %p2689_p2, %p2688_p6  ;;  %p2695_p10 = por %p2694_p9, %p2693_p8 }
  0x60   : > { %p2691_p7 = pneg %p2690_p4 }
  0x62   : > { %p2696_p11 = pnand %p2695_p10, %p2691_p7 }
  0x64   : > { %2699 = shalt.err (!%p2696_p11)
}
  0x65   : > { %s2700_s4 = scalar_lea.vmem %s3023_s18, 512  ;;  %s2833_s30 = smov [#allocation2]  }
  0x66   : > { %p2701_p1 = scmp.ne.s32.totalorder %s3023_s18, %s2700_s4  ;;  %s2705_s25 = sshll.u32 %s2833_s30, 4  ;;  %s2706_s25 = int_to_ptr.vmem [resolvable:$false] %s2705_s25 }
  0x67   : > { %s2707_s6 = scalar_lea.vmem %s2706_s25, 1024  ;;  %p2708_p13 = scmp.lt.s32.totalorder %s3023_s18, %s2706_s25 }
  0x68   : > { %p2703_p6 = pnand %p2701_p1, %p2689_p2  ;;  %p2709_p12 = scmp.lt.s32.totalorder %s2707_s6, %s2700_s4 }
  0x6a   : > { %p2704_p4 = pneg %p2703_p6  ;;  %p2710_p5 = por %p2709_p12, %p2708_p13 }
  0x6c   : > { %p2711_p8 = pnand %p2710_p5, %p2704_p4 }
  0x6e   : > { %2714 = shalt.err (!%p2711_p8)
}
  0x6f   : > { %2250 = dma.hbm_to_vmem [thread:$0]  (!%p3027_p0), %s3021_s11, 512, %s3023_s18, %s360_s8  }
  0x70   : > { %s2020_s27 = sshll.u32 %s2823_s16, 7  ;;  %s3237_s30 = sshll.u32 %s3006_s22, 3 }
  0x71   : > { %s3062_s17 = scalar_lea.hbm %s3205_s1, %s2020_s27  ;;  %s382_s4 = scalar_lea.vmem [#allocation5], %s3237_s30 }
  0x72   : > { %s389_s6 = sshll.u32 %s382_s4, 4  ;;  %s3238_s25 = sand.u32 1, %s2823_s16   ;;  %s390_s6 = int_to_ptr.vmem [resolvable:$true] %s389_s6 }
  0x73   : > { %s379_s0 = scalar_lea.sflag [#allocation6], %s3238_s25  ;;  %s2715_s21 = scalar_lea.hbm %s3062_s17, 128 }
  0x74   : > { %p2716_p1 = scmp.ne.s32.totalorder %s3062_s17, %s2715_s21  ;;  %s2720_s18 = scalar_lea.hbm %s3205_s1, 512 }
  0x75   : > { %p2721_p13 = scmp.lt.s32.totalorder %s3062_s17, %s3205_s1  ;;  %p2722_p7 = scmp.lt.s32.totalorder %s2720_s18, %s2715_s21 }
  0x76   : > { %p2718_p5 = pnand %p2716_p1, %p2689_p2 }
  0x77   : > { %p2723_p9 = por %p2722_p7, %p2721_p13 }
  0x78   : > { %p2719_p12 = pneg %p2718_p5 }
  0x7a   : > { %p2724_p10 = pnand %p2723_p9, %p2719_p12 }
  0x7c   : > { %2727 = shalt.err (!%p2724_p10)
}
  0x7d   : > { %s2728_s23 = scalar_lea.vmem %s390_s6, 128  ;;  %s2834_s28 = smov [#allocation5]  }
  0x7e   : > { %p2729_p11 = scmp.ne.s32.totalorder %s390_s6, %s2728_s23  ;;  %s2733_s30 = sshll.u32 %s2834_s28, 4  ;;  %s2734_s30 = int_to_ptr.vmem [resolvable:$false] %s2733_s30 }
  0x7f   : > { %s2735_s4 = scalar_lea.vmem %s2734_s30, 256  ;;  %p2736_p8 = scmp.lt.s32.totalorder %s390_s6, %s2734_s30 }
  0x80   : > { %p2731_p6 = pnand %p2729_p11, %p2689_p2  ;;  %p2737_p1 = scmp.lt.s32.totalorder %s2735_s4, %s2728_s23 }
  0x82   : > { %p2732_p4 = pneg %p2731_p6  ;;  %p2738_p5 = por %p2737_p1, %p2736_p8 }
  0x84   : > { %p2739_p3 = pnand %p2738_p5, %p2732_p4 }
  0x86   : > { %2742 = shalt.err (!%p2739_p3)
}
  0x87   : > { %2253 = dma.hbm_to_vmem [thread:$0]  (!%p3027_p0), %s3062_s17, 128, %s390_s6, %s379_s0  }
  0x88   : > { %p3239_p12 = scmp.ne.s32.totalorder %s3224_s20, 0 }
  0x89   : > { %s3089_s21 = sand.u32 (!%p3239_p12), 1, %s2815_s14   ;;  %p3240_p3 = scmp.ne.s32.totalorder (!%p3239_p12), %s3232_s24, 0 }
  0x8a   : > { %398 = sbr.rel (%p3239_p12) target bundleno = 1073 (0x431), region = 60  ;;  %s2022_s25 = sshll.u32 (!%p3239_p12), %s3089_s21, 5 }
  0x8b   : > { %s401_s8 = scalar_lea.sflag (!%p3239_p12), [#allocation3], %s3089_s21  ;;  %s3095_s11 = scalar_lea.vmem (!%p3239_p12), [#allocation2], %s2022_s25 }
  0x8f   : > { %2786 = dma.done.wait (%p3240_p3), %s401_s8, 512  }
  0x90   : > { %2788 = vsyncadd (%p3240_p3), %s401_s8, 4294966784  ;;  %s409_s0 = sand.u32 1, %s2913_s19   ;;  %s2023_s2 = sshll.u32 %s3089_s21, 3 }
  0x91   : > { %s410_s20 = scalar_lea.sflag [#allocation6], %s409_s0  ;;  %s3103_s17 = scalar_lea.vmem [#allocation5], %s2023_s2 }
  0x92   : > { %2790 = dma.done.wait (%p3240_p3), %s410_s20, 128  }
  0x93   : > { %2792 = vsyncadd (%p3240_p3), %s410_s20, 4294967168  ;;  %p3241_p0 = scmp.eq.s32.totalorder %s2913_s19, 0 }
  0x95   : > { %2794 = dma.done.wait (%p3241_p0), [#allocation6], 8192   ;;  %p3242_p2 = pmov %p3241_p0 }
  0x96   : > { %p3243_p13 = pmov %p3241_p0 }
  0x97   : > { %2796 = vsyncadd (%p3242_p2), [#allocation6], 4294959104 }
  0x98   : > { %2798 = dma.done.wait (%p3243_p13), [#allocation9], 6144   ;;  %p3244_p7 = pmov %p3241_p0 }
  0x99   : > { %p3245_p9 = pmov %p3241_p0 }
  0x9a   : > { %2800 = vsyncadd (%p3244_p7), [#allocation9], 4294961152 }
  0x9b   : > { %2802 = dma.done.wait (%p3245_p9), [#allocation12], 8192   ;;  %p3246_p10 = pmov %p3241_p0 }
  0x9c   : > { %v2309_v0 = vld [vmem:[#allocation7 + $0x74] ss:$8 sps:$4 sm:$0xff]   ;;  %v2313_v2 = vld [vmem:[#allocation7 + $0x70] ss:$8 sps:$4 sm:$0xff]   ;;  %v2315_v4 = vld [vmem:[#allocation7 + $0x64] ss:$8 sps:$4 sm:$0xff]  }
  0x9d   : > { %2804 = vsyncadd (%p3246_p10), [#allocation12], 4294959104  ;;  %v2311_v1 = vld [vmem:[#allocation7 + $0x174] ss:$8 sps:$4 sm:$0xff]   ;;  %876 = vmatprep.subr.bf16.mxu0 %v2309_v0  ;;  %v2314_v3 = vld [vmem:[#allocation7 + $0x170] ss:$8 sps:$4 sm:$0xff]  }
  0x9e   : > { %917 = vmatprep.subr.bf16.mxu1 %v2311_v1  ;;  %877 = vmatpush1.bf16.msra.mxu0 %v2313_v2  ;;  %v2317_v5 = vld [vmem:[#allocation7 + $0x164] ss:$8 sps:$4 sm:$0xff]   ;;  %v2319_v6 = vld [vmem:[#allocation7 + $0x60] ss:$8 sps:$4 sm:$0xff]   ;;  %v2321_v8 = vld [vmem:[#allocation7 + $0x54] ss:$8 sps:$4 sm:$0xff]  }
  0x9f   : > { %918 = vmatpush1.bf16.msra.mxu1 %v2314_v3  ;;  %878 = vmatprep.subr.bf16.mxu0 %v2315_v4  ;;  %v2320_v7 = vld [vmem:[#allocation7 + $0x160] ss:$8 sps:$4 sm:$0xff]   ;;  %v2323_v9 = vld [vmem:[#allocation7 + $0x154] ss:$8 sps:$4 sm:$0xff]   ;;  %v2325_v10 = vld [vmem:[#allocation7 + $0x50] ss:$8 sps:$4 sm:$0xff]  }
  0xa0   : > { %919 = vmatprep.subr.bf16.mxu1 %v2317_v5  ;;  %v2326_v11 = vld [vmem:[#allocation7 + $0x150] ss:$8 sps:$4 sm:$0xff]   ;;  %v2327_v12 = vld [vmem:[#allocation7 + $0x44] ss:$8 sps:$4 sm:$0xff]   ;;  %v2331_v14 = vld [vmem:[#allocation7 + $0x40] ss:$8 sps:$4 sm:$0xff]  }
  0xa1   : > { %v2329_v13 = vld [vmem:[#allocation7 + $0x144] ss:$8 sps:$4 sm:$0xff]   ;;  %v2332_v15 = vld [vmem:[#allocation7 + $0x140] ss:$8 sps:$4 sm:$0xff]   ;;  %v2333_v16 = vld [vmem:[#allocation7 + $0x34] ss:$8 sps:$4 sm:$0xff]  }
  0xa2   : > { %879 = vmatpush1.bf16.msra.mxu0 %v2319_v6  ;;  %v2335_v17 = vld [vmem:[#allocation7 + $0x134] ss:$8 sps:$4 sm:$0xff]   ;;  %v2337_v18 = vld [vmem:[#allocation7 + $0x30] ss:$8 sps:$4 sm:$0xff]   ;;  %v2339_v20 = vld [vmem:[#allocation7 + $0x24] ss:$8 sps:$4 sm:$0xff]  }
  0xa3   : > { %920 = vmatpush1.bf16.msra.mxu1 %v2320_v7  ;;  %880 = vmatprep.subr.bf16.mxu0 %v2321_v8  ;;  %v2338_v19 = vld [vmem:[#allocation7 + $0x130] ss:$8 sps:$4 sm:$0xff]   ;;  %v2341_v21 = vld [vmem:[#allocation7 + $0x124] ss:$8 sps:$4 sm:$0xff]   ;;  %v2343_v22 = vld [vmem:[#allocation7 + $0x20] ss:$8 sps:$4 sm:$0xff]  }
  0xa4   : > { %921 = vmatprep.subr.bf16.mxu1 %v2323_v9  ;;  %v2344_v23 = vld [vmem:[#allocation7 + $0x120] ss:$8 sps:$4 sm:$0xff]   ;;  %v2345_v24 = vld [vmem:[#allocation7 + $0x14] ss:$8 sps:$4 sm:$0xff]   ;;  %v2349_v26 = vld [vmem:[#allocation7 + $0x10] ss:$8 sps:$4 sm:$0xff]  }
  0xa5   : > { %v2347_v25 = vld [vmem:[#allocation7 + $0x114] ss:$8 sps:$4 sm:$0xff]   ;;  %v2350_v27 = vld [vmem:[#allocation7 + $0x110] ss:$8 sps:$4 sm:$0xff]   ;;  %v2351_v28 = vld [vmem:[#allocation7 + $0x4] ss:$8 sps:$4 sm:$0xff]  }
  0xa6   : > { %881 = vmatpush1.bf16.msra.mxu0 %v2325_v10  ;;  %v2353_v29 = vld [vmem:[#allocation7 + $0x104] ss:$8 sps:$4 sm:$0xff]   ;;  %v2355_v30 = vld [vmem:[#allocation7] ss:$8 sps:$4 sm:$0xff]   ;;  %v2357_v32 = vld [vmem:[#allocation7 + $0xf4] ss:$8 sps:$4 sm:$0xff]  }
  0xa7   : > { %922 = vmatpush1.bf16.msra.mxu1 %v2326_v11  ;;  %882 = vmatprep.subr.bf16.mxu0 %v2327_v12  ;;  %v2356_v31 = vld [vmem:[#allocation7 + $0x100] ss:$8 sps:$4 sm:$0xff]   ;;  %v2359_v33 = vld [vmem:[#allocation7 + $0x1f4] ss:$8 sps:$4 sm:$0xff]   ;;  %v2361_v34 = vld [vmem:[#allocation7 + $0xf0] ss:$8 sps:$4 sm:$0xff]  }
  0xa8   : > { %923 = vmatprep.subr.bf16.mxu1 %v2329_v13  ;;  %v2362_v35 = vld [vmem:[#allocation7 + $0x1f0] ss:$8 sps:$4 sm:$0xff]   ;;  %v2363_v36 = vld [vmem:[#allocation7 + $0xe4] ss:$8 sps:$4 sm:$0xff]   ;;  %v2367_v38 = vld [vmem:[#allocation7 + $0xe0] ss:$8 sps:$4 sm:$0xff]  }
  0xa9   : > { %v2365_v37 = vld [vmem:[#allocation7 + $0x1e4] ss:$8 sps:$4 sm:$0xff]   ;;  %v2368_v39 = vld [vmem:[#allocation7 + $0x1e0] ss:$8 sps:$4 sm:$0xff]   ;;  %v2369_v40 = vld [vmem:[#allocation7 + $0xd4] ss:$8 sps:$4 sm:$0xff]  }
  0xaa   : > { %883 = vmatpush1.bf16.msra.mxu0 %v2331_v14  ;;  %v2371_v41 = vld [vmem:[#allocation7 + $0x1d4] ss:$8 sps:$4 sm:$0xff]   ;;  %v2373_v42 = vld [vmem:[#allocation7 + $0xd0] ss:$8 sps:$4 sm:$0xff]   ;;  %v2375_v44 = vld [vmem:[#allocation7 + $0xc4] ss:$8 sps:$4 sm:$0xff]  }
  0xab   : > { %924 = vmatpush1.bf16.msra.mxu1 %v2332_v15  ;;  %884 = vmatprep.subr.bf16.mxu0 %v2333_v16  ;;  %v2374_v43 = vld [vmem:[#allocation7 + $0x1d0] ss:$8 sps:$4 sm:$0xff]   ;;  %v2377_v45 = vld [vmem:[#allocation7 + $0x1c4] ss:$8 sps:$4 sm:$0xff]   ;;  %v2379_v47 = vld [vmem:[#allocation7 + $0xc0] ss:$8 sps:$4 sm:$0xff]  }
  0xac   : > { %925 = vmatprep.subr.bf16.mxu1 %v2335_v17  ;;  %v473_v46 = vld [vmem:[%s3095_s11 + $0x8] sm:$0xff]  ;;  %v2380_v48 = vld [vmem:[#allocation7 + $0x1c0] ss:$8 sps:$4 sm:$0xff]   ;;  %v2387_v56 = vld [vmem:[#allocation7 + $0xa4] ss:$8 sps:$4 sm:$0xff]   ;;  %s2211_s4 = sshll.u32 %s2913_s19, 9 }
  0xad   : > { %v477_v49 = vpack.c.bf16 %v473_v46, %v473_v46  ;;  %v475_v50 = vld [vmem:[%s3095_s11 + $0x18] sm:$0xff]  ;;  %v2381_v51 = vld [vmem:[#allocation7 + $0xb4] ss:$8 sps:$4 sm:$0xff]   ;;  %v2385_v54 = vld [vmem:[#allocation7 + $0xb0] ss:$8 sps:$4 sm:$0xff]   ;;  %s470_s8 = scalar_lea.vmem [#allocation13], %s2022_s25  ;;  %s3162_s20 = scalar_lea.hbm %s3214_s10, %s2211_s4 }
  0xae   : > { %885 = vmatpush1.bf16.msra.mxu0 %v2337_v18  ;;  %v479_v52 = vpack.c.bf16 %v475_v50, %v475_v50  ;;  %v2383_v53 = vld [vmem:[#allocation7 + $0x1b4] ss:$8 sps:$4 sm:$0xff]   ;;  %v2386_v55 = vld [vmem:[#allocation7 + $0x1b0] ss:$8 sps:$4 sm:$0xff]   ;;  %v2389_v57 = vld [vmem:[#allocation7 + $0x1a4] ss:$8 sps:$4 sm:$0xff]  }
  0xaf   : > { %926 = vmatpush1.bf16.msra.mxu1 %v2338_v19  ;;  %886 = vmatprep.subr.bf16.mxu0 %v2339_v20  ;;  %v2391_v58 = vld [vmem:[#allocation7 + $0xa0] ss:$8 sps:$4 sm:$0xff]   ;;  %v2393_v60 = vld [vmem:[#allocation7 + $0x94] ss:$8 sps:$4 sm:$0xff]   ;;  %v2397_v62 = vld [vmem:[#allocation7 + $0x90] ss:$8 sps:$4 sm:$0xff]  }
  0xb0   : > { %927 = vmatprep.subr.bf16.mxu1 %v2341_v21  ;;  %908 = vmatprep.mubr.bf16.mxu0 %v477_v49  ;;  %v2392_v59 = vld [vmem:[#allocation7 + $0x1a0] ss:$8 sps:$4 sm:$0xff]   ;;  %v2395_v61 = vld [vmem:[#allocation7 + $0x194] ss:$8 sps:$4 sm:$0xff]   ;;  %v2398_v63 = vld [vmem:[#allocation7 + $0x190] ss:$8 sps:$4 sm:$0xff]  }
  0xb1   : > { %949 = vmatprep.mubr.bf16.mxu1 %v479_v52  ;;  %v2399_v0 = vld [vmem:[#allocation7 + $0x84] ss:$8 sps:$4 sm:$0xff]   ;;  %v2403_v2 = vld [vmem:[#allocation7 + $0x80] ss:$8 sps:$4 sm:$0xff]   ;;  %v472_v4 = vld [vmem:[%s3095_s11] sm:$0xff]  ;;  %s1864_s19 = scalar_lea.sflag [#allocation4], %s3089_s21 }
  0xb2   : > { %887 = vmatpush1.bf16.msra.mxu0 %v2343_v22  ;;  %v2401_v1 = vld [vmem:[#allocation7 + $0x184] ss:$8 sps:$4 sm:$0xff]   ;;  %v2404_v3 = vld [vmem:[#allocation7 + $0x180] ss:$8 sps:$4 sm:$0xff]   ;;  %v2407_v6 = vld [vmem:[#allocation8 + $0x74] ss:$8 sps:$4 sm:$0xff]   ;;  %v476_v8 = vpack.c.bf16 %v472_v4, %v472_v4 }
  0xb3   : > { %928 = vmatpush1.bf16.msra.mxu1 %v2344_v23  ;;  %888 = vmatprep.subr.bf16.mxu0 %v2345_v24  ;;  %v474_v5 = vld [vmem:[%s3095_s11 + $0x10] sm:$0xff]  ;;  %v2405_v7 = vld [vmem:[#allocation8 + $0x70] ss:$8 sps:$4 sm:$0xff]   ;;  %v2413_v12 = vld [vmem:[#allocation8 + $0x54] ss:$8 sps:$4 sm:$0xff]   ;;  %s1878_s11 = sshll.u32 %s470_s8, 4  ;;  %s3164_s11 = int_to_ptr.vmem [resolvable:$true] %s1878_s11 }
  0xb4   : > { %929 = vmatprep.subr.bf16.mxu1 %v2347_v25  ;;  %v478_v9 = vpack.c.bf16 %v474_v5, %v474_v5  ;;  %v2410_v10 = vld [vmem:[#allocation8 + $0x64] ss:$8 sps:$4 sm:$0xff]   ;;  %v2408_v11 = vld [vmem:[#allocation8 + $0x60] ss:$8 sps:$4 sm:$0xff]   ;;  %v2411_v13 = vld [vmem:[#allocation8 + $0x50] ss:$8 sps:$4 sm:$0xff]  }
  0xb5   : > { %v2416_v14 = vld [vmem:[#allocation8 + $0x44] ss:$8 sps:$4 sm:$0xff]   ;;  %v2414_v15 = vld [vmem:[#allocation8 + $0x40] ss:$8 sps:$4 sm:$0xff]   ;;  %v2419_v16 = vld [vmem:[#allocation8 + $0x34] ss:$8 sps:$4 sm:$0xff]  }
  0xb6   : > { %889 = vmatpush1.bf16.msra.mxu0 %v2349_v26  ;;  %v2417_v17 = vld [vmem:[#allocation8 + $0x30] ss:$8 sps:$4 sm:$0xff]   ;;  %v2422_v18 = vld [vmem:[#allocation8 + $0x24] ss:$8 sps:$4 sm:$0xff]   ;;  %v2420_v19 = vld [vmem:[#allocation8 + $0x20] ss:$8 sps:$4 sm:$0xff]  }
  0xb7   : > { %930 = vmatpush1.bf16.msra.mxu1 %v2350_v27  ;;  %890 = vmatprep.subr.bf16.mxu0 %v2351_v28  ;;  %v2425_v20 = vld [vmem:[#allocation8 + $0x14] ss:$8 sps:$4 sm:$0xff]   ;;  %v2423_v21 = vld [vmem:[#allocation8 + $0x10] ss:$8 sps:$4 sm:$0xff]   ;;  %v2428_v22 = vld [vmem:[#allocation8 + $0x4] ss:$8 sps:$4 sm:$0xff]  }
  0xb8   : > { %931 = vmatprep.subr.bf16.mxu1 %v2353_v29  ;;  %v2426_v23 = vld [vmem:[#allocation8] ss:$8 sps:$4 sm:$0xff]   ;;  %v2431_v24 = vld [vmem:[#allocation8 + $0xf4] ss:$8 sps:$4 sm:$0xff]   ;;  %v2429_v25 = vld [vmem:[#allocation8 + $0xf0] ss:$8 sps:$4 sm:$0xff]  }
  0xb9   : > { %v2434_v26 = vld [vmem:[#allocation8 + $0xe4] ss:$8 sps:$4 sm:$0xff]   ;;  %v2432_v27 = vld [vmem:[#allocation8 + $0xe0] ss:$8 sps:$4 sm:$0xff]   ;;  %v2437_v28 = vld [vmem:[#allocation8 + $0xd4] ss:$8 sps:$4 sm:$0xff]  }
  0xba   : > { %891 = vmatpush1.bf16.msra.mxu0 %v2355_v30  ;;  %v2435_v29 = vld [vmem:[#allocation8 + $0xd0] ss:$8 sps:$4 sm:$0xff]   ;;  %v2440_v30 = vld [vmem:[#allocation8 + $0xc4] ss:$8 sps:$4 sm:$0xff]   ;;  %s2743_s25 = scalar_lea.vmem %s3164_s11, 512  ;;  %p3247_p6 = scmp.ne.s32.totalorder %s3233_s26, 0 }
  0xbb   : > { %932 = vmatpush1.bf16.msra.mxu1 %v2356_v31  ;;  %892 = vmatprep.subr.bf16.mxu0 %v2357_v32  ;;  %v2438_v31 = vld [vmem:[#allocation8 + $0xc0] ss:$8 sps:$4 sm:$0xff]   ;;  %v2443_v32 = vld [vmem:[#allocation8 + $0xb4] ss:$8 sps:$4 sm:$0xff]   ;;  %v2459_v4 = vld [vmem:[#allocation10 + $0x50] ss:$8 sps:$4 sm:$0xff]   ;;  %p2744_p11 = scmp.ne.s32.totalorder %s3164_s11, %s2743_s25 }
  0xbc   : > { %933 = vmatprep.subr.bf16.mxu1 %v2359_v33  ;;  %v2441_v33 = vld [vmem:[#allocation8 + $0xb0] ss:$8 sps:$4 sm:$0xff]   ;;  %v2464_v5 = vld [vmem:[#allocation10 + $0x44] ss:$8 sps:$4 sm:$0xff]  }
  0xbd   : > { %p2745_p4 = pnand %p2744_p11, %p3247_p6 }
  0xbe   : > { %893 = vmatpush2.bf16.msra.mxu0 %v2361_v34  ;;  %v2446_v34 = vld [vmem:[#allocation8 + $0xa4] ss:$8 sps:$4 sm:$0xff]  }
  0xbf   : > { %934 = vmatpush2.bf16.msra.mxu1 %v2362_v35  ;;  %894 = vmatprep.subr.bf16.mxu0 %v2363_v36  ;;  %v2444_v35 = vld [vmem:[#allocation8 + $0xa0] ss:$8 sps:$4 sm:$0xff]   ;;  %v2449_v36 = vld [vmem:[#allocation8 + $0x94] ss:$8 sps:$4 sm:$0xff]   ;;  %p2746_p8 = pneg %p2745_p4 }
  0xc0   : > { %935 = vmatprep.subr.bf16.mxu1 %v2365_v37  ;;  %v2447_v37 = vld [vmem:[#allocation8 + $0x90] ss:$8 sps:$4 sm:$0xff]  }
  0xc2   : > { %895 = vmatpush2.bf16.msra.mxu0 %v2367_v38  ;;  %v2452_v38 = vld [vmem:[#allocation8 + $0x84] ss:$8 sps:$4 sm:$0xff]  }
  0xc3   : > { %936 = vmatpush2.bf16.msra.mxu1 %v2368_v39  ;;  %896 = vmatprep.subr.bf16.mxu0 %v2369_v40  ;;  %v2450_v39 = vld [vmem:[#allocation8 + $0x80] ss:$8 sps:$4 sm:$0xff]   ;;  %v2453_v40 = vld [vmem:[#allocation10 + $0x70] ss:$8 sps:$4 sm:$0xff]  }
  0xc4   : > { %937 = vmatprep.subr.bf16.mxu1 %v2371_v41  ;;  %v2455_v41 = vld [vmem:[#allocation10 + $0x74] ss:$8 sps:$4 sm:$0xff]  }
  0xc6   : > { %897 = vmatpush2.bf16.msra.mxu0 %v2373_v42  ;;  %v546_v42 = vlaneseq }
  0xc7   : > { %938 = vmatpush2.bf16.msra.mxu1 %v2374_v43  ;;  %898 = vmatprep.subr.bf16.mxu0 %v2375_v44 }
  0xc8   : > { %939 = vmatprep.subr.bf16.mxu1 %v2377_v45  ;;  %v3125_v43 = vshrl.u32 %v546_v42, 7  ;;  %v544_v45 = vld [vmem:[%s3207_s3] sm:$0x3]  ;;  %v2552_v42 = vld [vmem:[#allocation11 + $0x168] ss:$16 sps:$4 sm:$0xff]  }
  0xca   : > { %899 = vmatpush2.bf16.msra.mxu0 %v2379_v47  ;;  %v3128_v44 = vsub.s32 0, %v3125_v43  ;;  %v3134_v46 = vsub.s32 1, %v3125_v43 }
  0xcb   : > { %940 = vmatpush2.bf16.msra.mxu1 %v2380_v48  ;;  %900 = vmatprep.subr.bf16.mxu0 %v2381_v51 }
  0xcc   : > { %941 = vmatprep.subr.bf16.mxu1 %v2383_v53  ;;  %v549_v47 = vrot.slane %v544_v45, %v3128_v44  ;;  %v553_v48 = vrot.slane %v544_v45, %v3134_v46  ;;  %v2560_v45 = vld [vmem:[#allocation11 + $0x14c] ss:$16 sps:$4 sm:$0xff]  }
  0xce   : > { %901 = vmatpush2.bf16.msra.mxu0 %v2385_v54 }
  0xcf   : > { %942 = vmatpush2.bf16.msra.mxu1 %v2386_v55  ;;  %902 = vmatprep.subr.bf16.mxu0 %v2387_v56 }
  0xd0   : > { %943 = vmatprep.subr.bf16.mxu1 %v2389_v57 }
  0xd2   : > { %903 = vmatpush2.bf16.msra.mxu0 %v2391_v58 }
  0xd3   : > { %944 = vmatpush2.bf16.msra.mxu1 %v2392_v59  ;;  %904 = vmatprep.subr.bf16.mxu0 %v2393_v60 }
  0xd4   : > { %945 = vmatprep.subr.bf16.mxu1 %v2395_v61 }
  0xd6   : > { %905 = vmatpush2.bf16.msra.mxu0 %v2397_v62 }
  0xd7   : > { %946 = vmatpush2.bf16.msra.mxu1 %v2398_v63  ;;  %906 = vmatprep.subr.bf16.mxu0 %v2399_v0 }
  0xd8   : > { %947 = vmatprep.subr.bf16.mxu1 %v2401_v1  ;;  %v2458_v1 = vld [vmem:[#allocation10 + $0x64] ss:$8 sps:$4 sm:$0xff]  }
  0xda   : > { %907 = vmatpush2.bf16.msra.mxu0 %v2403_v2  ;;  %v2456_v2 = vld [vmem:[#allocation10 + $0x60] ss:$8 sps:$4 sm:$0xff]  }
  0xdb   : > { %948 = vmatpush2.bf16.msra.mxu1 %v2404_v3  ;;  %1166 = vmatprep.subr.bf16.mxu0 %v2407_v6  ;;  %v2461_v3 = vld [vmem:[#allocation10 + $0x54] ss:$8 sps:$4 sm:$0xff]   ;;  %v2462_v6 = vld [vmem:[#allocation10 + $0x40] ss:$8 sps:$4 sm:$0xff]  }
  0xdc   : > { %1322 = vmatprep.subr.bf16.mxu1 %v2455_v41  ;;  %v2554_v41 = vld [vmem:[#allocation11 + $0x16c] ss:$16 sps:$4 sm:$0xff]  }
  0xdd   : > { %909 = vmatmul.mubr.bf16.vlgmr.msra.gmra.mxu0 %v476_v8  ;;  %v2465_v8 = vld [vmem:[#allocation10 + $0x30] ss:$8 sps:$4 sm:$0xff]  }
  0xde   : > { %950 = vmatmul.mubr.bf16.vlgmr.msra.gmra.mxu1 %v478_v9  ;;  %1167 = vmatpush1.bf16.msra.mxu0 %v2405_v7  ;;  %v2467_v7 = vld [vmem:[#allocation10 + $0x34] ss:$8 sps:$4 sm:$0xff]   ;;  %v2470_v9 = vld [vmem:[#allocation10 + $0x24] ss:$8 sps:$4 sm:$0xff]  }
  0xdf   : > { %1168 = vmatprep.subr.bf16.mxu0 %v2410_v10  ;;  %1323 = vmatpush1.bf16.msra.mxu1 %v2453_v40  ;;  %v2835_v10 = vmov 0   ;;  %v2546_v40 = vld [vmem:[#allocation11 + $0x188] ss:$16 sps:$4 sm:$0xff]  }
  0xe0   : > { %1324 = vmatprep.subr.bf16.mxu1 %v2458_v1  ;;  %1354 = vmatprep.mubr.bf16.mxu1 %v2835_v10  ;;  %v2485_v1 = vld [vmem:[#allocation11 + $0xc4] ss:$16 sps:$4 sm:$0xff]   ;;  %v2507_v10 = vld [vmem:[#allocation11 + $0x40] ss:$16 sps:$4 sm:$0xff]  }
  0xe2   : > { %1169 = vmatpush1.bf16.msra.mxu0 %v2408_v11  ;;  %v2468_v11 = vld [vmem:[#allocation10 + $0x20] ss:$8 sps:$4 sm:$0xff]  }
  0xe3   : > { %1170 = vmatprep.subr.bf16.mxu0 %v2413_v12  ;;  %1325 = vmatpush1.bf16.msra.mxu1 %v2456_v2  ;;  %v2473_v12 = vld [vmem:[#allocation10 + $0x14] ss:$8 sps:$4 sm:$0xff]   ;;  %v2483_v2 = vld [vmem:[#allocation11 + $0xc0] ss:$16 sps:$4 sm:$0xff]  }
  0xe4   : > { %1326 = vmatprep.subr.bf16.mxu1 %v2461_v3  ;;  %v2491_v3 = vld [vmem:[#allocation11 + $0xa4] ss:$16 sps:$4 sm:$0xff]  }
  0xe6   : > { %1171 = vmatpush1.bf16.msra.mxu0 %v2411_v13  ;;  %v2471_v13 = vld [vmem:[#allocation10 + $0x10] ss:$8 sps:$4 sm:$0xff]  }
  0xe7   : > { %1172 = vmatprep.subr.bf16.mxu0 %v2416_v14  ;;  %1327 = vmatpush1.bf16.msra.mxu1 %v2459_v4  ;;  %v2476_v14 = vld [vmem:[#allocation10 + $0x4] ss:$8 sps:$4 sm:$0xff]   ;;  %v2489_v4 = vld [vmem:[#allocation11 + $0xa0] ss:$16 sps:$4 sm:$0xff]  }
  0xe8   : > { %1328 = vmatprep.subr.bf16.mxu1 %v2464_v5  ;;  %v2497_v5 = vld [vmem:[#allocation11 + $0x84] ss:$16 sps:$4 sm:$0xff]  }
  0xea   : > { %1173 = vmatpush1.bf16.msra.mxu0 %v2414_v15  ;;  %v2474_v15 = vld [vmem:[#allocation10] ss:$8 sps:$4 sm:$0xff]  }
  0xeb   : > { %1174 = vmatprep.subr.bf16.mxu0 %v2419_v16  ;;  %1329 = vmatpush1.bf16.msra.mxu1 %v2462_v6  ;;  %v2479_v16 = vld [vmem:[#allocation11 + $0xe4] ss:$16 sps:$4 sm:$0xff]   ;;  %v2495_v6 = vld [vmem:[#allocation11 + $0x80] ss:$16 sps:$4 sm:$0xff]  }
  0xec   : > { %1330 = vmatprep.subr.bf16.mxu1 %v2467_v7  ;;  %v2503_v7 = vld [vmem:[#allocation11 + $0x64] ss:$16 sps:$4 sm:$0xff]  }
  0xee   : > { %1175 = vmatpush1.bf16.msra.mxu0 %v2417_v17  ;;  %v2480_v17 = vld [vmem:[#allocation11 + $0xe8] ss:$16 sps:$4 sm:$0xff]  }
  0xef   : > { %1176 = vmatprep.subr.bf16.mxu0 %v2422_v18  ;;  %1331 = vmatpush1.bf16.msra.mxu1 %v2465_v8  ;;  %v2482_v18 = vld [vmem:[#allocation11 + $0xec] ss:$16 sps:$4 sm:$0xff]   ;;  %v2501_v8 = vld [vmem:[#allocation11 + $0x60] ss:$16 sps:$4 sm:$0xff]  }
  0xf0   : > { %1332 = vmatprep.subr.bf16.mxu1 %v2470_v9  ;;  %v2509_v9 = vld [vmem:[#allocation11 + $0x44] ss:$16 sps:$4 sm:$0xff]  }
  0xf2   : > { %1177 = vmatpush1.bf16.msra.mxu0 %v2420_v19  ;;  %v2488_v19 = vld [vmem:[#allocation11 + $0xcc] ss:$16 sps:$4 sm:$0xff]  }
  0xf3   : > { %1178 = vmatprep.subr.bf16.mxu0 %v2425_v20  ;;  %1333 = vmatpush1.bf16.msra.mxu1 %v2468_v11  ;;  %v2486_v20 = vld [vmem:[#allocation11 + $0xc8] ss:$16 sps:$4 sm:$0xff]   ;;  %v2515_v11 = vld [vmem:[#allocation11 + $0x24] ss:$16 sps:$4 sm:$0xff]  }
  0xf4   : > { %1334 = vmatprep.subr.bf16.mxu1 %v2473_v12  ;;  %v2513_v12 = vld [vmem:[#allocation11 + $0x20] ss:$16 sps:$4 sm:$0xff]  }
  0xf6   : > { %1179 = vmatpush1.bf16.msra.mxu0 %v2423_v21  ;;  %v2494_v21 = vld [vmem:[#allocation11 + $0xac] ss:$16 sps:$4 sm:$0xff]  }
  0xf7   : > { %1180 = vmatprep.subr.bf16.mxu0 %v2428_v22  ;;  %1335 = vmatpush1.bf16.msra.mxu1 %v2471_v13  ;;  %v2492_v22 = vld [vmem:[#allocation11 + $0xa8] ss:$16 sps:$4 sm:$0xff]   ;;  %v2521_v13 = vld [vmem:[#allocation11 + $0x4] ss:$16 sps:$4 sm:$0xff]  }
  0xf8   : > { %1336 = vmatprep.subr.bf16.mxu1 %v2476_v14  ;;  %v2519_v14 = vld [vmem:[#allocation11] ss:$16 sps:$4 sm:$0xff]  }
  0xfa   : > { %1181 = vmatpush1.bf16.msra.mxu0 %v2426_v23  ;;  %v2500_v23 = vld [vmem:[#allocation11 + $0x8c] ss:$16 sps:$4 sm:$0xff]  }
  0xfb   : > { %1182 = vmatprep.subr.bf16.mxu0 %v2431_v24  ;;  %1337 = vmatpush1.bf16.msra.mxu1 %v2474_v15  ;;  %v2498_v24 = vld [vmem:[#allocation11 + $0x88] ss:$16 sps:$4 sm:$0xff]   ;;  %v2527_v15 = vld [vmem:[#allocation11 + $0x1e4] ss:$16 sps:$4 sm:$0xff]  }
  0xfc   : > { %1773 = vmatprep.subr.bf16.mxu1 %v2479_v16  ;;  %v2525_v16 = vld [vmem:[#allocation11 + $0x1e0] ss:$16 sps:$4 sm:$0xff]  }
  0xfe   : > { %1183 = vmatpush2.bf16.msra.mxu0 %v2429_v25  ;;  %v2506_v25 = vld [vmem:[#allocation11 + $0x6c] ss:$16 sps:$4 sm:$0xff]  }
  0xff   : > { %1184 = vmatprep.subr.bf16.mxu0 %v2434_v26  ;;  %v2504_v26 = vld [vmem:[#allocation11 + $0x68] ss:$16 sps:$4 sm:$0xff]  }
 0x102   : > { %1185 = vmatpush2.bf16.msra.mxu0 %v2432_v27  ;;  %v2512_v27 = vld [vmem:[#allocation11 + $0x4c] ss:$16 sps:$4 sm:$0xff]  }
 0x103   : > { %1186 = vmatprep.subr.bf16.mxu0 %v2437_v28  ;;  %v2510_v28 = vld [vmem:[#allocation11 + $0x48] ss:$16 sps:$4 sm:$0xff]  }
 0x106   : > { %1187 = vmatpush2.bf16.msra.mxu0 %v2435_v29  ;;  %v2518_v29 = vld [vmem:[#allocation11 + $0x2c] ss:$16 sps:$4 sm:$0xff]  }
 0x107   : > { %1188 = vmatprep.subr.bf16.mxu0 %v2440_v30  ;;  %v2516_v30 = vld [vmem:[#allocation11 + $0x28] ss:$16 sps:$4 sm:$0xff]  }
 0x10a   : > { %1189 = vmatpush2.bf16.msra.mxu0 %v2438_v31  ;;  %v2524_v31 = vld [vmem:[#allocation11 + $0xc] ss:$16 sps:$4 sm:$0xff]  }
 0x10b   : > { %1190 = vmatprep.subr.bf16.mxu0 %v2443_v32  ;;  %v2522_v32 = vld [vmem:[#allocation11 + $0x8] ss:$16 sps:$4 sm:$0xff]  }
 0x10e   : > { %1191 = vmatpush2.bf16.msra.mxu0 %v2441_v33  ;;  %v2530_v33 = vld [vmem:[#allocation11 + $0x1ec] ss:$16 sps:$4 sm:$0xff]  }
 0x10f   : > { %1192 = vmatprep.subr.bf16.mxu0 %v2446_v34  ;;  %v2528_v34 = vld [vmem:[#allocation11 + $0x1e8] ss:$16 sps:$4 sm:$0xff]  }
 0x112   : > { %1193 = vmatpush2.bf16.msra.mxu0 %v2444_v35  ;;  %v2536_v35 = vld [vmem:[#allocation11 + $0x1cc] ss:$16 sps:$4 sm:$0xff]  }
 0x113   : > { %1194 = vmatprep.subr.bf16.mxu0 %v2449_v36  ;;  %v2534_v36 = vld [vmem:[#allocation11 + $0x1c8] ss:$16 sps:$4 sm:$0xff]  }
 0x116   : > { %1195 = vmatpush2.bf16.msra.mxu0 %v2447_v37  ;;  %v2542_v37 = vld [vmem:[#allocation11 + $0x1ac] ss:$16 sps:$4 sm:$0xff]  }
 0x117   : > { %1196 = vmatprep.subr.bf16.mxu0 %v2452_v38  ;;  %v2540_v38 = vld [vmem:[#allocation11 + $0x1a8] ss:$16 sps:$4 sm:$0xff]  }
 0x11a   : > { %1197 = vmatpush2.bf16.msra.mxu0 %v2450_v39  ;;  %v2548_v39 = vld [vmem:[#allocation11 + $0x18c] ss:$16 sps:$4 sm:$0xff]  }
 0x11b   : > { %1814 = vmatprep.subr.bf16.mxu0 %v2482_v18  ;;  %v2531_v18 = vld [vmem:[#allocation11 + $0x1c0] ss:$16 sps:$4 sm:$0xff]  }
 0x19d   : > { %v910_v49 = vpop.f32.mrf.mxu0 }
 0x19e   : > { %v951_v50 = vpop.f32.mrf.mxu1  ;;  %v911_v51 = vadd.f32 %v910_v49, %v549_v47  ;;  %v2558_v47 = vld [vmem:[#allocation11 + $0x148] ss:$16 sps:$4 sm:$0xff]  }
 0x19f   : > { %v912_v52 = vpop.f32.mrf.mxu0 }
 0x1a0   : > { %v953_v53 = vpop.f32.mrf.mxu1  ;;  %v952_v54 = vadd.f32 %v951_v50, %v911_v51  ;;  %v913_v55 = vadd.f32 %v912_v52, %v553_v48  ;;  %v994_v48 = vld [vmem:[%s3209_s5] sm:$0x3] }
 0x1a1   : > { %v914_v56 = vpop.f32.mrf.mxu0  ;;  %v1003_v49 = vrot.slane %v994_v48, %v3134_v46 }
 0x1a2   : > { %v955_v57 = vpop.f32.mrf.mxu1  ;;  %v954_v58 = vadd.f32 %v953_v53, %v913_v55  ;;  %v958_v59 = vmax.f32 %v952_v54, 0.0 }
 0x1a3   : > { %v915_v60 = vpop.f32.mrf.mxu0  ;;  %v999_v57 = vrot.slane %v994_v48, %v3128_v44 }
 0x1a4   : > { %v956_v61 = vpop.f32.mrf.mxu1  ;;  %v959_v62 = vmax.f32 %v954_v58, 0.0  ;;  %v960_v0 = vpack.c.bf16 %v958_v59, %v958_v59  ;;  %v1207_v58 = vld [vmem:[%s3103_s17] sm:$0xff]  ;;  %s2836_s17 = smov [#allocation13]  }
 0x1a5   : > { %s2747_s24 = sshll.u32 %s2836_s17, 4  ;;  %s2748_s24 = int_to_ptr.vmem [resolvable:$false] %s2747_s24 }
 0x1a6   : > { %v961_v63 = vpack.c.bf16 %v959_v62, %v959_v62  ;;  %s2749_s6 = scalar_lea.vmem %s2748_s24, 1024  ;;  %p2750_p1 = scmp.lt.s32.totalorder %s3164_s11, %s2748_s24 }
 0x1a7   : > { %p2751_p5 = scmp.lt.s32.totalorder %s2749_s6, %s2743_s25 }
 0x1a8   : > { %1198 = vmatprep.mubr.bf16.mxu0 %v961_v63  ;;  %v2477_v63 = vld [vmem:[#allocation11 + $0xe0] ss:$16 sps:$4 sm:$0xff]  }
 0x1a9   : > { %1199 = vmatmul.mubr.bf16.vlgmr.msra.gmra.mxu0 %v960_v0  ;;  %p2752_p12 = por %p2751_p5, %p2750_p1 }
 0x1aa   : > { %1815 = vmatpush1.bf16.msra.mxu0 %v2480_v17  ;;  %v2533_v17 = vld [vmem:[#allocation11 + $0x1c4] ss:$16 sps:$4 sm:$0xff]  }
 0x1ab   : > { %1816 = vmatprep.subr.bf16.mxu0 %v2488_v19  ;;  %v2539_v19 = vld [vmem:[#allocation11 + $0x1a4] ss:$16 sps:$4 sm:$0xff]   ;;  %p2753_p3 = pnand %p2752_p12, %p2746_p8 }
 0x1ae   : > { %1817 = vmatpush1.bf16.msra.mxu0 %v2486_v20  ;;  %v2537_v20 = vld [vmem:[#allocation11 + $0x1a0] ss:$16 sps:$4 sm:$0xff]  }
 0x1af   : > { %1818 = vmatprep.subr.bf16.mxu0 %v2494_v21  ;;  %v2545_v21 = vld [vmem:[#allocation11 + $0x184] ss:$16 sps:$4 sm:$0xff]  }
 0x1b2   : > { %1819 = vmatpush1.bf16.msra.mxu0 %v2492_v22  ;;  %v2543_v22 = vld [vmem:[#allocation11 + $0x180] ss:$16 sps:$4 sm:$0xff]  }
 0x1b3   : > { %1820 = vmatprep.subr.bf16.mxu0 %v2500_v23  ;;  %v2551_v23 = vld [vmem:[#allocation11 + $0x164] ss:$16 sps:$4 sm:$0xff]  }
 0x1b6   : > { %1821 = vmatpush1.bf16.msra.mxu0 %v2498_v24  ;;  %v2549_v24 = vld [vmem:[#allocation11 + $0x160] ss:$16 sps:$4 sm:$0xff]  }
 0x1b7   : > { %1822 = vmatprep.subr.bf16.mxu0 %v2506_v25  ;;  %v2557_v25 = vld [vmem:[#allocation11 + $0x144] ss:$16 sps:$4 sm:$0xff]  }
 0x1ba   : > { %1823 = vmatpush1.bf16.msra.mxu0 %v2504_v26  ;;  %v2555_v26 = vld [vmem:[#allocation11 + $0x140] ss:$16 sps:$4 sm:$0xff]  }
 0x1bb   : > { %1824 = vmatprep.subr.bf16.mxu0 %v2512_v27  ;;  %v2563_v27 = vld [vmem:[#allocation11 + $0x124] ss:$16 sps:$4 sm:$0xff]  }
 0x1be   : > { %1825 = vmatpush1.bf16.msra.mxu0 %v2510_v28  ;;  %v2566_v28 = vld [vmem:[#allocation11 + $0x12c] ss:$16 sps:$4 sm:$0xff]  }
 0x1bf   : > { %1826 = vmatprep.subr.bf16.mxu0 %v2518_v29  ;;  %v2561_v29 = vld [vmem:[#allocation11 + $0x120] ss:$16 sps:$4 sm:$0xff]  }
 0x1c2   : > { %1827 = vmatpush1.bf16.msra.mxu0 %v2516_v30  ;;  %v2564_v30 = vld [vmem:[#allocation11 + $0x128] ss:$16 sps:$4 sm:$0xff]  }
 0x1c3   : > { %1828 = vmatprep.subr.bf16.mxu0 %v2524_v31  ;;  %v2569_v31 = vld [vmem:[#allocation11 + $0x104] ss:$16 sps:$4 sm:$0xff]  }
 0x1c6   : > { %1829 = vmatpush1.bf16.msra.mxu0 %v2522_v32  ;;  %v2572_v32 = vld [vmem:[#allocation11 + $0x10c] ss:$16 sps:$4 sm:$0xff]  }
 0x1c7   : > { %1830 = vmatprep.subr.bf16.mxu0 %v2530_v33  ;;  %v2567_v33 = vld [vmem:[#allocation11 + $0x100] ss:$16 sps:$4 sm:$0xff]  }
 0x1ca   : > { %1831 = vmatpush2.bf16.msra.mxu0 %v2528_v34  ;;  %v2570_v34 = vld [vmem:[#allocation11 + $0x108] ss:$16 sps:$4 sm:$0xff]  }
 0x1cb   : > { %1832 = vmatprep.subr.bf16.mxu0 %v2536_v35  ;;  %v1230_v35 = vld [vmem:[%s3211_s7] sm:$0x3] }
 0x1ce   : > { %1833 = vmatpush2.bf16.msra.mxu0 %v2534_v36  ;;  %v1235_v36 = vrot.slane %v1230_v35, %v3128_v44 }
 0x1cf   : > { %1834 = vmatprep.subr.bf16.mxu0 %v2542_v37  ;;  %v1239_v37 = vrot.slane %v1230_v35, %v3134_v46 }
 0x1d2   : > { %1835 = vmatpush2.bf16.msra.mxu0 %v2540_v38 }
 0x1d3   : > { %1836 = vmatprep.subr.bf16.mxu0 %v2548_v39 }
 0x1d6   : > { %1837 = vmatpush2.bf16.msra.mxu0 %v2546_v40 }
 0x1d7   : > { %1838 = vmatprep.subr.bf16.mxu0 %v2554_v41 }
 0x1da   : > { %1839 = vmatpush2.bf16.msra.mxu0 %v2552_v42 }
 0x1db   : > { %1840 = vmatprep.subr.bf16.mxu0 %v2560_v45 }
 0x1de   : > { %1841 = vmatpush2.bf16.msra.mxu0 %v2558_v47 }
 0x1df   : > { %1842 = vmatprep.subr.bf16.mxu0 %v2566_v28 }
 0x1e2   : > { %1843 = vmatpush2.bf16.msra.mxu0 %v2564_v30 }
 0x1e3   : > { %1844 = vmatprep.subr.bf16.mxu0 %v2572_v32 }
 0x1e6   : > { %1845 = vmatpush2.bf16.msra.mxu0 %v2570_v34 }
 0x269   : > { %v1200_v50 = vpop.f32.mrf.mxu0 }
 0x26a   : > { %v1201_v60 = vadd.f32 %v1200_v50, %v999_v57 }
 0x26b   : > { %v1202_v51 = vpop.f32.mrf.mxu0 }
 0x26c   : > { %v1203_v52 = vadd.f32 %v1202_v51, %v1003_v49  ;;  %v1443_v51 = vsub.s32 2, %v3125_v43 }
 0x26d   : > { %v1204_v53 = vpop.f32.mrf.mxu0 }
 0x26e   : > { %v1208_v54 = vmul.f32 0.5, %v1203_v52  ;;  %v1431_v52 = vld [vmem:[%s3213_s9] sm:$0xf]  ;;  %v1447_v53 = vsub.s32 3, %v3125_v43 }
 0x26f   : > { %v1205_v55 = vpop.f32.mrf.mxu0 }
 0x270   : > { %v1209_v56 = vmul.f32 1.442695, %v1208_v54  ;;  %v1436_v54 = vrot.slane %v1431_v52, %v3128_v44  ;;  %v1444_v55 = vrot.slane %v1431_v52, %v1443_v51  ;;  %v1448_v57 = vrot.slane %v1431_v52, %v1447_v53 }
 0x272   : > { %2573 = vpow2.f32 %v1209_v56  ;;  %v1440_v56 = vrot.slane %v1431_v52, %v3134_v46 }
 0x27f   : > { %v2574_v59 = vpop.eup %2573 }
 0x280   : > { %v1211_v61 = vmul.f32 %v2574_v59, %v1207_v58 }
 0x282   : > { %v1212_v62 = vadd.f32 %v1211_v61, %v1201_v60 }
 0x284   : > { %v1213_v0 = vpack.c.bf16 %v1212_v62, %v1212_v62 }
 0x286   : > { %1355 = vmatmul.mubr.bf16.vlgmr.msra.gmra.mxu1 %v1213_v0 }
 0x287   : > { %1774 = vmatpush1.bf16.msra.mxu1 %v2477_v63 }
 0x288   : > { %1775 = vmatprep.subr.bf16.mxu1 %v2485_v1 }
 0x28b   : > { %1776 = vmatpush1.bf16.msra.mxu1 %v2483_v2 }
 0x28c   : > { %1777 = vmatprep.subr.bf16.mxu1 %v2491_v3 }
 0x28f   : > { %1778 = vmatpush1.bf16.msra.mxu1 %v2489_v4 }
 0x290   : > { %1779 = vmatprep.subr.bf16.mxu1 %v2497_v5 }
 0x293   : > { %1780 = vmatpush1.bf16.msra.mxu1 %v2495_v6 }
 0x294   : > { %1781 = vmatprep.subr.bf16.mxu1 %v2503_v7 }
 0x297   : > { %1782 = vmatpush1.bf16.msra.mxu1 %v2501_v8 }
 0x298   : > { %1783 = vmatprep.subr.bf16.mxu1 %v2509_v9 }
 0x29b   : > { %1784 = vmatpush1.bf16.msra.mxu1 %v2507_v10 }
 0x29c   : > { %1785 = vmatprep.subr.bf16.mxu1 %v2515_v11 }
 0x29f   : > { %1786 = vmatpush1.bf16.msra.mxu1 %v2513_v12 }
 0x2a0   : > { %1787 = vmatprep.subr.bf16.mxu1 %v2521_v13 }
 0x2a3   : > { %1788 = vmatpush1.bf16.msra.mxu1 %v2519_v14 }
 0x2a4   : > { %1789 = vmatprep.subr.bf16.mxu1 %v2527_v15 }
 0x2a7   : > { %1790 = vmatpush2.bf16.msra.mxu1 %v2525_v16 }
 0x2a8   : > { %1791 = vmatprep.subr.bf16.mxu1 %v2533_v17 }
 0x2ab   : > { %1792 = vmatpush2.bf16.msra.mxu1 %v2531_v18 }
 0x2ac   : > { %1793 = vmatprep.subr.bf16.mxu1 %v2539_v19 }
 0x2af   : > { %1794 = vmatpush2.bf16.msra.mxu1 %v2537_v20 }
 0x2b0   : > { %1795 = vmatprep.subr.bf16.mxu1 %v2545_v21 }
 0x2b3   : > { %1796 = vmatpush2.bf16.msra.mxu1 %v2543_v22 }
 0x2b4   : > { %1797 = vmatprep.subr.bf16.mxu1 %v2551_v23 }
 0x2b7   : > { %1798 = vmatpush2.bf16.msra.mxu1 %v2549_v24 }
 0x2b8   : > { %1799 = vmatprep.subr.bf16.mxu1 %v2557_v25 }
 0x2bb   : > { %1800 = vmatpush2.bf16.msra.mxu1 %v2555_v26 }
 0x2bc   : > { %1801 = vmatprep.subr.bf16.mxu1 %v2563_v27 }
 0x2bf   : > { %1802 = vmatpush2.bf16.msra.mxu1 %v2561_v29 }
 0x2c0   : > { %1803 = vmatprep.subr.bf16.mxu1 %v2569_v31 }
 0x2c3   : > { %1804 = vmatpush2.bf16.msra.mxu1 %v2567_v33 }
 0x346   : > { %v1356_v38 = vpop.f32.mrf.mxu1 }
 0x347   : > { %v1357_v39 = vadd.f32 %v1356_v38, %v1235_v36 }
 0x348   : > { %v1358_v40 = vpop.f32.mrf.mxu1 }
 0x349   : > { %v1359_v41 = vadd.f32 %v1358_v40, %v1239_v37  ;;  %v1363_v42 = vmax.f32 %v1357_v39, 0.0 }
 0x34a   : > { %v1360_v45 = vpop.f32.mrf.mxu1 }
 0x34b   : > { %v1364_v47 = vmax.f32 %v1359_v41, 0.0  ;;  %v1365_v50 = vpack.c.bf16 %v1363_v42, %v1363_v42 }
 0x34c   : > { %v1361_v48 = vpop.f32.mrf.mxu1 }
 0x34d   : > { %v1366_v49 = vpack.c.bf16 %v1364_v47, %v1364_v47 }
 0x34f   : > { %1805 = vmatprep.mubr.bf16.mxu1 %v1366_v49  ;;  %1846 = vmatprep.mubr.bf16.mxu0 %v1366_v49 }
 0x350   : > { %1806 = vmatmul.mubr.bf16.vlgmr.msra.gmra.mxu1 %v1365_v50  ;;  %1847 = vmatmul.mubr.bf16.vlgmr.msra.gmra.mxu0 %v1365_v50 }
 0x410   : > { %v1807_v58 = vpop.f32.mrf.mxu1  ;;  %v1848_v59 = vpop.f32.mrf.mxu0 }
 0x411   : > { %v1808_v60 = vadd.f32 %v1807_v58, %v1436_v54  ;;  %v1849_v61 = vadd.f32 %v1848_v59, %v1444_v55 }
 0x412   : > { %v1809_v62 = vpop.f32.mrf.mxu1  ;;  %v1850_v63 = vpop.f32.mrf.mxu0 }
 0x413   : > { %2575 = vtanh.f32 %v1808_v60  ;;  %v1810_v0 = vadd.f32 %v1809_v62, %v1440_v56  ;;  %v1851_v1 = vadd.f32 %v1850_v63, %v1448_v57 }
 0x414   : > { %2577 = vtanh.f32 %v1849_v61  ;;  %v1811_v2 = vpop.f32.mrf.mxu1  ;;  %v1852_v43 = vpop.f32.mrf.mxu0 }
 0x415   : > { %2579 = vtanh.f32 %v1810_v0 }
 0x416   : > { %2581 = vtanh.f32 %v1851_v1  ;;  %v1812_v44 = vpop.f32.mrf.mxu1  ;;  %v1853_v46 = vpop.f32.mrf.mxu0 }
 0x420   : > { %v2576_v3 = vpop.eup %2575 }
 0x421   : > { %v2578_v4 = vpop.eup %2577  ;;  %1859 = vst [vmem:[%s470_s8] sm:$0xff] %v2576_v3 }
 0x422   : > { %v2580_v5 = vpop.eup %2579  ;;  %1861 = vst [vmem:[%s470_s8 + $0x10] sm:$0xff] %v2578_v4 }
 0x423   : > { %v2582_v6 = vpop.eup %2581  ;;  %1860 = vst [vmem:[%s470_s8 + $0x8] sm:$0xff] %v2580_v5 }
 0x424   : > { %1862 = vst [vmem:[%s470_s8 + $0x18] sm:$0xff] %v2582_v6 }
 0x425   : > { %2756 = shalt.err (!%p2753_p3)
}
 0x426   : > { %s2757_s18 = scalar_lea.hbm %s3162_s20, 512  ;;  %s2761_s22 = scalar_lea.hbm %s3214_s10, 2048 }
 0x427   : > { %p2758_p0 = scmp.ne.s32.totalorder %s3162_s20, %s2757_s18  ;;  %p2762_p7 = scmp.lt.s32.totalorder %s3162_s20, %s3214_s10 }
 0x428   : > { %p2763_p9 = scmp.lt.s32.totalorder %s2761_s22, %s2757_s18 }
 0x429   : > { %p2759_p2 = pnand %p2758_p0, %p3247_p6 }
 0x42a   : > { %p2764_p10 = por %p2763_p9, %p2762_p7 }
 0x42b   : > { %p2760_p13 = pneg %p2759_p2 }
 0x42d   : > { %p2765_p11 = pnand %p2764_p10, %p2760_p13 }
 0x42f   : > { %2768 = shalt.err (!%p2765_p11)
}
 0x430   : > { %2232 = dma.vmem_to_hbm [thread:$0]  (%p3247_p6), %s3164_s11, 512, %s3162_s20, %s1864_s19  }
 0x431 PF: > { %p2267_p4 = scmp.ge.s32.totalorder %s2823_s16, 2  ;;  %s1890_s30 = sand.u32 1, %s2811_s13  }
 0x432   : > { %p3248_p8 = scmp.ne.s32.totalorder %s3234_s29, 0  ;;  %s1891_s4 = scalar_lea.sflag [#allocation4], %s1890_s30 }
 0x434   : > { %p2255_p1 = pnand %p2267_p4, %p3248_p8 }
 0x436   : > { %p2256_p5 = pneg %p2255_p1 }
 0x438   : > { %2806 = dma.done.wait (%p2256_p5), %s1891_s4, 512  }
 0x439   : > { %2808 = vsyncadd (%p2256_p5), %s1891_s4, 4294966784  ;;  %s3249_s8 = sld [smem:[#allocation20_spill]]  ;;  %p28_p12 = scmp.ge.s32.totalorder %s2980_s12, 6  }
 0x43a   : > { %s3250_s13 = smov %s2815_s14  ;;  %s3251_s14 = smov %s2819_s15 }
 0x43b   : > { %s3253_s16 = smov %s2980_s12  ;;  %30 = sbr.rel (!%p28_p12) target bundleno = 15 (0xf), region = 134 }
 0x43f   : > { %s3252_s15 = smov %s3249_s8 }
 0x440   :  { %1896 = vsyncpa [#allocation3], 1 }
 0x441   :  { %1898 = vsyncpa [#allocation3 + $0x1], 1 }
 0x442   :  { %1899 = vsyncpa [#allocation6], 1 }
 0x443   :  { %1901 = vsyncpa [#allocation6 + $0x1], 1 }
 0x444   :  { %1902 = vsyncpa [#allocation9], 1 }
 0x445   :  { %1903 = vsyncpa [#allocation12], 1 }
 0x446   :  { %1904 = vsyncpa [#allocation4], 1 }
 0x447   :  { %1906 = vsyncpa [#allocation4 + $0x1], 1 }

</bundles_post_ra>
